<compile_context>
chip_gen: v5e
topology: v5e:2x2
jax: 0.10.0
libtpu: 0.0.40
codegen_flags: <defaults>
</compile_context>

<pallas_src>
import jax
import jax.numpy as jnp
from jax.experimental import pallas as pl
from jax.experimental.pallas import tpu as pltpu

NUM_FILTERS = 32
HIDDEN = 5 * NUM_FILTERS  # 160


# ---------------------------------------------------------------------------
# Kernel
# ---------------------------------------------------------------------------
def _similarity_kernel(q_ref, s_ref, w_ref, b_ref, out_ref):
    """TM (q, s) row pairs per grid step.

    q_ref: [TM, H_in]  caller dtype (bf16/f32)
    s_ref: [TM, H_out] caller dtype
    w_ref: [H_out, H_in] bf16 (native nn.Linear layout, resident across grid)
    b_ref: [1, H_out] f32
    out_ref: [1, 1, TM] f32 -- lane-dense row of scores (unmasked vst).
    """
    s = s_ref[...]
    # MXU: (s @ W) with low-precision operands, f32 accumulation.
    t = jnp.dot(s.astype(w_ref.dtype), w_ref[...],
                preferred_element_type=jnp.float32)            # [TM, H_in] f32
    # VPU elementwise in f32 (v5e has no bf16 VPU), XLU reductions (idle slot).
    q = q_ref[...].astype(jnp.float32)
    s32 = s.astype(jnp.float32)
    scores = (jnp.sum(t * q, axis=-1)
              + jnp.sum(s32 * b_ref[...], axis=-1))            # [TM] f32
    out_ref[...] = scores.reshape(1, 1, -1)                    # lane-major row


# ---------------------------------------------------------------------------
# Wrappers
# ---------------------------------------------------------------------------
def prepare_params(weight, bias, param_dtype=jnp.bfloat16):
    """One-time parameter prep (paid once at init, never per forward).

    weight: [H_out, H_in] nn.Linear weight, kept untransposed.
    bias:   [H_out]
    param_dtype: bf16 by default; jnp.float8_e4m3fn is a v7x-only option
                 (halves the weight DMA, larger quantization error).
    """
    w = jnp.asarray(weight).astype(param_dtype)
    b = jnp.asarray(bias).astype(jnp.float32).reshape(1, -1)
    return w, b


def similarity_forward_batched(output_q, output_s, params, *, tile_m=256):
    """Batched forward: [M, H_in] x [M, H_out] -> [M] scores (one per row pair).

    Amortizes launch + weight DMA over M pairs; the 'parallel' row grid lets
    v7x's two TensorCores split the row tiles. Ragged M is zero-padded to a
    multiple of the row tile and sliced afterwards (padded rows score 0).
    """
    w, b = params
    h_out, h_in = w.shape
    m = output_q.shape[0]
    tm = min(tile_m, m)
    m_pad = ((m + tm - 1) // tm) * tm
    if m_pad != m:
        output_q = jnp.pad(output_q, ((0, m_pad - m), (0, 0)))
        output_s = jnp.pad(output_s, ((0, m_pad - m), (0, 0)))
    g = m_pad // tm

    act_bytes = output_q.dtype.itemsize
    cost = pl.CostEstimate(
        flops=2 * m_pad * h_in * h_out + 4 * m_pad * h_in,
        transcendentals=0,
        bytes_accessed=(int(w.size) * w.dtype.itemsize
                        + m_pad * (h_in + h_out) * act_bytes
                        + h_out * 4 + m_pad * 4),
    )

    out = pl.pallas_call(
        _similarity_kernel,
        out_shape=jax.ShapeDtypeStruct((g, 1, tm), jnp.float32),
        grid=(g,),
        in_specs=[
            pl.BlockSpec((tm, h_in), lambda i: (i, 0)),     # q rows (native dtype)
            pl.BlockSpec((tm, h_out), lambda i: (i, 0)),    # s rows (native dtype)
            pl.BlockSpec((h_out, h_in), lambda i: (0, 0)),  # W, resident across grid
            pl.BlockSpec((1, h_out), lambda i: (0, 0)),     # b, resident across grid
        ],
        out_specs=pl.BlockSpec((1, 1, tm), lambda i: (i, 0, 0)),  # lane-dense
        compiler_params=pltpu.CompilerParams(dimension_semantics=("parallel",)),
        cost_estimate=cost,
    )(output_q, output_s, w, b)
    return out.reshape(m_pad)[:m]


def similarity_forward(output_q, output_s, params):
    """Module-equivalent forward: output_q [1, H], output_s [1, H] -> [1].

    At M = 1 the cost is entirely the custom-call launch + the ~51 KB weight
    DMA, so single pairs are routed through the batched kernel; callers that
    can buffer pairs should call similarity_forward_batched directly.
    """
    return similarity_forward_batched(output_q, output_s, params)


# ---------------------------------------------------------------------------
# Demo / correctness check
# ---------------------------------------------------------------------------
if __name__ == "__main__":
    key = jax.random.PRNGKey(0)
    k_q, k_s, k_w, k_b, k_bq, k_bs = jax.random.split(key, 6)

    # nn.Linear default init: U(-1/sqrt(H), 1/sqrt(H))
    bound = 1.0 / (HIDDEN ** 0.5)
    weight = jax.random.uniform(k_w, (HIDDEN, HIDDEN), jnp.float32, -bound, bound)
    bias = jax.random.uniform(k_b, (HIDDEN,), jnp.float32, -bound, bound)
    params = prepare_params(weight, bias)          # one-time: bf16 W, f32 b
    w_f32 = params[0].astype(jnp.float32)

    # ----- module-equivalent single-pair forward (activations stay bf16) -----
    output_q = jax.random.normal(k_q, (1, HIDDEN), jnp.bfloat16)
    output_s = jax.random.normal(k_s, (1, HIDDEN), jnp.bfloat16)

    fwd = jax.jit(similarity_forward)
    score = fwd(output_q, output_s, params)
    jax.block_until_ready(score)
    assert score.shape == (1,)

    # Tight reference with identical dtype handling (bf16 operands, f32 math).
    q32 = output_q.astype(jnp.float32)
    s32 = output_s.astype(jnp.float32)
    ref = (jnp.sum((s32 @ w_f32) * q32) + jnp.sum(s32 * bias)).reshape(1)
    assert jnp.allclose(score, ref, atol=1e-2, rtol=1e-2), (score, ref)

    # Loose full-f32 PyTorch-module semantics check (covers bf16 weight storage).
    ref_f32 = (s32 @ (q32 @ weight.T + bias).T).reshape(1)
    assert jnp.allclose(score, ref_f32, atol=0.3, rtol=0.05), (score, ref_f32)

    # ----- batched path: ragged M, grid of 2 so both v7x TCs participate -----
    M = 500                                   # padded to 512 internally (TM=256)
    bq = jax.random.normal(k_bq, (M, HIDDEN), jnp.bfloat16)
    bs = jax.random.normal(k_bs, (M, HIDDEN), jnp.bfloat16)

    fwd_b = jax.jit(similarity_forward_batched)
    scores = fwd_b(bq, bs, params)
    jax.block_until_ready(scores)
    assert scores.shape == (M,)

    bq32 = bq.astype(jnp.float32)
    bs32 = bs.astype(jnp.float32)
    ref_b = jnp.sum((bs32 @ w_f32) * bq32, axis=-1) + bs32 @ bias
    assert jnp.allclose(scores, ref_b, atol=1e-2, rtol=1e-2), (
        float(jnp.max(jnp.abs(scores - ref_b))))

    print("KERNEL_OK")
</pallas_src>

<mosaic_0001>
module attributes {stable_mosaic.version = 11 : i64} {
  func.func @_similarity_kernel(%arg0: i32, %arg1: memref<1x160xbf16, #tpu.memory_space<vmem>>, %arg2: memref<1x160xbf16, #tpu.memory_space<vmem>>, %arg3: memref<160x160xbf16, #tpu.memory_space<vmem>>, %arg4: memref<1x160xf32, #tpu.memory_space<vmem>>, %arg5: memref<1x1x1xf32, #tpu.memory_space<vmem>>) attributes {dimension_semantics = [#tpu.dimension_semantics<parallel>], iteration_bounds = array<i64: 1>, scalar_prefetch = 0 : i64, scratch_operands = 0 : i64, tpu.core_type = #tpu.core_type<tc>, window_params = [{transform_indices = @transform_0, window_bounds = array<i64: 1, 160>}, {transform_indices = @transform_1, window_bounds = array<i64: 1, 160>}, {pipeline_mode = #tpu.pipeline_mode<synchronous>, transform_indices = @transform_2, window_bounds = array<i64: 160, 160>}, {pipeline_mode = #tpu.pipeline_mode<synchronous>, transform_indices = @transform_3, window_bounds = array<i64: 1, 160>}, {transform_indices = @transform_4, window_bounds = array<i64: 1, 1, 1>}]} {
    %c0 = arith.constant 0 : index
    %c0_0 = arith.constant 0 : index
    %0 = vector.load %arg2[%c0, %c0_0] : memref<1x160xbf16, #tpu.memory_space<vmem>>, vector<1x160xbf16>
    %c0_1 = arith.constant 0 : index
    %c0_2 = arith.constant 0 : index
    %1 = vector.load %arg3[%c0_1, %c0_2] : memref<160x160xbf16, #tpu.memory_space<vmem>>, vector<160x160xbf16>
    %cst = arith.constant dense<0.000000e+00> : vector<1x160xf32>
    %2 = tpu.matmul %0, %1, %cst {dimension_numbers = #tpu.dot_dimension_numbers<[1], [0], [0], [1], [0, 0, 1, 1], [], []>} : vector<1x160xbf16>, vector<160x160xbf16>, vector<1x160xf32> -> vector<1x160xf32>
    %c0_3 = arith.constant 0 : index
    %c0_4 = arith.constant 0 : index
    %3 = vector.load %arg1[%c0_3, %c0_4] : memref<1x160xbf16, #tpu.memory_space<vmem>>, vector<1x160xbf16>
    %4 = arith.extf %3 : vector<1x160xbf16> to vector<1x160xf32>
    %5 = arith.extf %0 : vector<1x160xbf16> to vector<1x160xf32>
    %6 = arith.mulf %2, %4 : vector<1x160xf32>
    %cst_5 = arith.constant dense<0.000000e+00> : vector<1xf32>
    %7 = vector.multi_reduction <add>, %6, %cst_5 [1] : vector<1x160xf32> to vector<1xf32>
    %c0_6 = arith.constant 0 : index
    %c0_7 = arith.constant 0 : index
    %8 = vector.load %arg4[%c0_6, %c0_7] : memref<1x160xf32, #tpu.memory_space<vmem>>, vector<1x160xf32>
    %9 = arith.mulf %5, %8 : vector<1x160xf32>
    %cst_8 = arith.constant dense<0.000000e+00> : vector<1xf32>
    %10 = vector.multi_reduction <add>, %9, %cst_8 [1] : vector<1x160xf32> to vector<1xf32>
    %11 = arith.addf %7, %10 : vector<1xf32>
    %12 = vector.shape_cast %11 : vector<1xf32> to vector<1x1x1xf32>
    %c0_9 = arith.constant 0 : index
    %c0_10 = arith.constant 0 : index
    %c0_11 = arith.constant 0 : index
    %13 = vector.load %arg5[%c0_9, %c0_10, %c0_11] : memref<1x1x1xf32, #tpu.memory_space<vmem>>, vector<1x1x1xf32>
    tpu.vector_store %arg5[%c0_9, %c0_10, %c0_11], %12 {strides = array<i32>} : memref<1x1x1xf32, #tpu.memory_space<vmem>>, vector<1x1x1xf32>,
    return
  }
  func.func @transform_0(%arg0: i32) -> (i32, i32) {
    %c0_i32 = arith.constant 0 : i32
    %c0_i32_0 = arith.constant 0 : i32
    return %arg0, %c0_i32 : i32, i32
  }
  func.func @transform_1(%arg0: i32) -> (i32, i32) {
    %c0_i32 = arith.constant 0 : i32
    %c0_i32_0 = arith.constant 0 : i32
    return %arg0, %c0_i32 : i32, i32
  }
  func.func @transform_2(%arg0: i32) -> (i32, i32) {
    %c0_i32 = arith.constant 0 : i32
    %c0_i32_0 = arith.constant 0 : i32
    %c0_i32_1 = arith.constant 0 : i32
    return %c0_i32, %c0_i32_0 : i32, i32
  }
  func.func @transform_3(%arg0: i32) -> (i32, i32) {
    %c0_i32 = arith.constant 0 : i32
    %c0_i32_0 = arith.constant 0 : i32
    %c0_i32_1 = arith.constant 0 : i32
    return %c0_i32, %c0_i32_0 : i32, i32
  }
  func.func @transform_4(%arg0: i32) -> (i32, i32, i32) {
    %c0_i32 = arith.constant 0 : i32
    %c0_i32_0 = arith.constant 0 : i32
    %c0_i32_1 = arith.constant 0 : i32
    return %arg0, %c0_i32, %c0_i32_0 : i32, i32, i32
  }
}

</mosaic_0001>

<bundles_post_ra>
// kernel: similarity_forward.1
= control target key start
LH: loop header
LB: loop body
LE: loop exit
PB: predicated region body
PF: predicated region fallthrough
CT: control target
= control target key end

     0   :  { %9 = vsyncpa [#allocation3], 0  ;;  %s561_s0 = inlined_call_operand.hbm [shape: bf16[1,160], index: 0, kind: input, shape index: {}]   ;;  %s562_s1 = inlined_call_operand.hbm [shape: bf16[1,160], index: 1, kind: input, shape index: {}]   ;;  %s563_s2 = inlined_call_operand.hbm [shape: bf16[160,160], index: 2, kind: input, shape index: {}]   ;;  %s564_s3 = inlined_call_operand.vmem [shape: f32[1,160], index: 3, kind: input, shape index: {}]   ;;  %s565_s4 = inlined_call_operand.hbm [shape: f32[1,1,1], index: 4, kind: output, shape index: {}]  }
   0x1   :  { %10 = vsyncpa [#allocation6], 0  ;;  %s28_s17 = sshll.u32 %s562_s1, 4  ;;  %s29_s17 = int_to_ptr.hbm [resolvable:$true] %s28_s17 }
   0x2   :  { %11 = vsyncpa [#allocation4], 0  ;;  %s510_s18 = smov [#allocation5]   ;;  %s17_s22 = sshll.u32 %s561_s0, 4  ;;  %s18_s22 = int_to_ptr.hbm [resolvable:$true] %s17_s22 }
   0x3   :  { %s30_s19 = sshll.u32 %s510_s18, 4  ;;  %s511_s23 = smov [#allocation2]   ;;  %s31_s19 = int_to_ptr.vmem [resolvable:$true] %s30_s19 }
   0x4   :  { %33 = dma.hbm_to_vmem [thread:$0]  %s29_s17, 32, %s31_s19, [#allocation6]  }
   0x5   :  { %s19_s24 = sshll.u32 %s511_s23, 4  ;;  %s38_s27 = sshll.u32 %s563_s2, 4  ;;  %s20_s24 = int_to_ptr.vmem [resolvable:$true] %s19_s24  ;;  %s39_s27 = int_to_ptr.hbm [resolvable:$true] %s38_s27 }
   0x6   :  { %22 = dma.hbm_to_vmem [thread:$0]  %s18_s22, 32, %s20_s24, [#allocation3]  }
   0x7   :  { %s512_s1 = smov [#allocation7]   ;;  %s513_s29 = smov 128  }
   0x8   :  { %s40_s28 = sshll.u32 %s512_s1, 4  ;;  %s514_s30 = smov 8   ;;  %s41_s28 = int_to_ptr.vmem [resolvable:$true] %s40_s28 }
   0x9   :  { %46 = dma.hbm_to_vmem [thread:$0]  %s39_s27, 2560, %s41_s28, [#allocation6], %s513_s29, %s513_s29, %s514_s30  }
   0xa   :  { %504 = dma.done.wait [#allocation3], 32  }
   0xb   :  { %505 = vsyncadd [#allocation3], 4294967264 }
   0xc   :  { %506 = dma.done.wait [#allocation6], 2592  }
   0xd   :  { %507 = vsyncadd [#allocation6], 4294964704  ;;  %v357_v0 = vld [vmem:[#allocation7 + $0x70] sm:$0xf]  ;;  %v396_v1 = vld [vmem:[#allocation7 + $0x74] sm:$0xf0] }
   0xe   :  { %v395_v2 = vld [vmem:[#allocation7 + $0x74] sm:$0xf]  ;;  %v358_v3 = vor.u32 %v396_v1, %v357_v0  ;;  %v359_v4 = vld [vmem:[#allocation7 + $0x78] sm:$0xf0]  ;;  %v349_v5 = vld [vmem:[#allocation7 + $0x60] sm:$0xf] }
   0xf   :  { %v394_v6 = vld [vmem:[#allocation7 + $0x64] sm:$0xf0]  ;;  %v362_v7 = vor.u32 %v395_v2, %v359_v4  ;;  %v393_v8 = vld [vmem:[#allocation7 + $0x64] sm:$0xf]  ;;  %v351_v9 = vld [vmem:[#allocation7 + $0x68] sm:$0xf0] }
  0x10   :  { %191 = vmatpush.bf16.msra.mxu0 %v358_v3  ;;  %v350_v10 = vor.u32 %v394_v6, %v349_v5  ;;  %v354_v11 = vor.u32 %v393_v8, %v351_v9  ;;  %v341_v12 = vld [vmem:[#allocation7 + $0x50] sm:$0xf]  ;;  %v392_v13 = vld [vmem:[#allocation7 + $0x54] sm:$0xf0]  ;;  %v391_v14 = vld [vmem:[#allocation7 + $0x54] sm:$0xf] }
  0x11   :  { %217 = vmatpush.bf16.msra.mxu2 %v362_v7  ;;  %v343_v15 = vld [vmem:[#allocation7 + $0x58] sm:$0xf0]  ;;  %v399_v16 = vld [vmem:[#allocation7 + $0x94] sm:$0xf]  ;;  %v342_v17 = vor.u32 %v392_v13, %v341_v12  ;;  %v333_v18 = vld [vmem:[#allocation7 + $0x40] sm:$0xf] }
  0x12   :  { %v390_v19 = vld [vmem:[#allocation7 + $0x44] sm:$0xf0]  ;;  %v375_v20 = vld [vmem:[#allocation7 + $0x98] sm:$0xf0]  ;;  %v346_v21 = vor.u32 %v391_v14, %v343_v15  ;;  %v389_v22 = vld [vmem:[#allocation7 + $0x44] sm:$0xf] }
  0x13   :  { %v335_v23 = vld [vmem:[#allocation7 + $0x48] sm:$0xf0]  ;;  %v378_v24 = vor.u32 %v399_v16, %v375_v20  ;;  %v397_v25 = vld [vmem:[#allocation7 + $0x84] sm:$0xf]  ;;  %v373_v27 = vld [vmem:[#allocation7 + $0x90] sm:$0xf]  ;;  %v334_v32 = vor.u32 %v390_v19, %v333_v18 }
  0x14   :  { %192 = vmatpush.bf16.msra.mxu0 %v350_v10  ;;  %v367_v26 = vld [vmem:[#allocation7 + $0x88] sm:$0xf0]  ;;  %v400_v28 = vld [vmem:[#allocation7 + $0x94] sm:$0xf0]  ;;  %v551_v31 = vld [vmem:[#allocation5] sm:$0x3]  ;;  %v338_v34 = vor.u32 %v389_v22, %v335_v23 }
  0x15   :  { %218 = vmatpush.bf16.msra.mxu2 %v354_v11  ;;  %236 = vmatpush.bf16.msra.mxu3 %v378_v24  ;;  %v370_v29 = vor.u32 %v397_v25, %v367_v26  ;;  %v374_v30 = vor.u32 %v400_v28, %v373_v27  ;;  %v325_v33 = vld [vmem:[#allocation7 + $0x30] sm:$0xf]  ;;  %84 = vst [vmem:[#allocation1] ss:$9 sm:$0xff] %v551_v31  ;;  %v388_v35 = vld [vmem:[#allocation7 + $0x34] sm:$0xf0]  ;;  %v245_v12 = vunpack.c.l.bf16 %v551_v31 }
  0x16   :  { %v365_v36 = vld [vmem:[#allocation7 + $0x80] sm:$0xf]  ;;  %v398_v37 = vld [vmem:[#allocation7 + $0x84] sm:$0xf0]  ;;  %v387_v38 = vld [vmem:[#allocation7 + $0x34] sm:$0xf]  ;;  %v326_v41 = vor.u32 %v388_v35, %v325_v33 }
  0x17   :  { %210 = vmatpush.bf16.msra.mxu1 %v374_v30  ;;  %v327_v39 = vld [vmem:[#allocation7 + $0x38] sm:$0xf0]  ;;  %v366_v40 = vor.u32 %v398_v37, %v365_v36  ;;  %v317_v43 = vld [vmem:[#allocation7 + $0x20] sm:$0xf]  ;;  %v386_v44 = vld [vmem:[#allocation7 + $0x24] sm:$0xf0] }
  0x18   :  { %193 = vmatpush.bf16.msra.mxu0 %v342_v17  ;;  %v330_v42 = vor.u32 %v387_v38, %v327_v39  ;;  %vm188_vm0 = vcmask 261120   ;;  %v385_v45 = vld [vmem:[#allocation7 + $0x24] sm:$0xf]  ;;  %v319_v46 = vld [vmem:[#allocation7 + $0x28] sm:$0xf0]  ;;  %v318_v48 = vor.u32 %v386_v44, %v317_v43  ;;  %vm253_vm1 = vcmask 1040384  }
  0x19   :  { %219 = vmatpush.bf16.msra.mxu2 %v346_v21  ;;  %237 = vmatpush.bf16.msra.mxu3 %v370_v29  ;;  %v322_v49 = vor.u32 %v385_v45, %v319_v46  ;;  %v309_v50 = vld [vmem:[#allocation7 + $0x10] sm:$0xf]  ;;  %v384_v51 = vld [vmem:[#allocation7 + $0x14] sm:$0xf0]  ;;  %v383_v52 = vld [vmem:[#allocation7 + $0x14] sm:$0xf] }
  0x1a   :  { %v311_v53 = vld [vmem:[#allocation7 + $0x18] sm:$0xf0]  ;;  %v310_v54 = vor.u32 %v384_v51, %v309_v50  ;;  %v301_v56 = vld [vmem:[#allocation7] sm:$0xf]  ;;  %v382_v57 = vld [vmem:[#allocation7 + $0x4] sm:$0xf0] }
  0x1b   :  { %211 = vmatpush.bf16.msra.mxu1 %v366_v40  ;;  %v314_v55 = vor.u32 %v383_v52, %v311_v53  ;;  %v381_v58 = vld [vmem:[#allocation7 + $0x4] sm:$0xf]  ;;  %v303_v59 = vld [vmem:[#allocation7 + $0x8] sm:$0xf0]  ;;  %v302_v60 = vor.u32 %v382_v57, %v301_v56  ;;  %v243_v2 = vld [vmem:[#allocation2] sm:$0x3] }
  0x1c   :  { %194 = vmatpush.bf16.msra.mxu0 %v334_v32  ;;  %v86_v47 = vld [vmem:[#allocation1 + $0x9] sm:$0xff]  ;;  %v306_v61 = vor.u32 %v381_v58, %v303_v59  ;;  %v85_v62 = vld [vmem:[#allocation1] sm:$0xff]  ;;  %v515_v3 = vmov 857870592   ;;  %v244_v5 = vunpack.c.l.bf16 %v243_v2  ;;  %vm255_vm2 = vcmask 253952   ;;  %s288_s8 = sshll.u32 %s565_s4, 4  ;;  %s289_s8 = int_to_ptr.hbm [resolvable:$true] %s288_s8 }
  0x1d   :  { %220 = vmatpush.bf16.msra.mxu2 %v338_v34  ;;  %380 = vmatmul.msk.bf16.vlgmr.msra.gmra.mxu3 %vm188_vm0, %v86_v47  ;;  %v263_v4 = vunpack.c.l.s4 %v515_v3  ;;  %v260_v9 = vld [vmem:[%s564_s3] sm:$0x3]  ;;  %s516_s3 = smov [#allocation8]   ;;  %vm279_vm3 = vcmask 0  }
  0x1e   :  { %379 = vmatmul.msk.bf16.vlgmr.msra.gmra.mxu1 %vm188_vm0, %v86_v47  ;;  %v247_v11 = vperm.slane %v244_v5, 0  ;;  %v248_v15 = vperm.slane %v244_v5, 2  ;;  %s286_s5 = sshll.u32 %s516_s3, 4  ;;  %s287_s5 = int_to_ptr.vmem [resolvable:$true] %s286_s5 }
  0x1f   :  { %v264_v8 = vunpack.c.0.s8 %v263_v4 }
  0x20   :  { %195 = vmatpush.bf16.msra.mxu0 %v326_v41 }
  0x21   :  { %221 = vmatpush.bf16.msra.mxu2 %v330_v42  ;;  %v265_v13 = vperm.slane %v260_v9, %v264_v8 }
  0x23   :  { %v267_v19 = vmul.f32 %v265_v13, %v245_v12 }
  0x24   :  { %196 = vmatpush.bf16.msra.mxu0 %v318_v48 }
  0x25   :  { %222 = vmatpush.bf16.msra.mxu2 %v322_v49  ;;  %v269_v23 = vperm.slane %v267_v19, 0  ;;  %v270_v24 = vperm.slane %v267_v19, 2 }
  0x27   :  { %v273_v27 = vsel %vm253_vm1, %v269_v23, 0.0  ;;  %v274_v28 = vsel %vm255_vm2, %v270_v24, 0.0 }
  0x28   :  { %197 = vmatpush.bf16.msra.mxu0 %v310_v54  ;;  %v275_v29 = vadd.f32 %v274_v28, %v273_v27 }
  0x29   :  { %223 = vmatpush.bf16.msra.mxu2 %v314_v55 }
  0x2c   :  { %198 = vmatpush.bf16.msra.mxu0 %v302_v60 }
  0x2d   :  { %224 = vmatpush.bf16.msra.mxu2 %v306_v61 }
  0x2f   :  { %199 = vmatmul.bf16.vlgmr.msra.gmra.mxu0 %v85_v62 }
  0x30   :  { %225 = vmatmul.bf16.vlgmr.msra.gmra.mxu2 %v85_v62 }
  0x9b   :  { %v213_v63 = vpop.f32.mrf.mxu1 }
  0xa0   :  { %v239_v0 = vpop.f32.mrf.mxu3 }
  0xa3   :  { %v215_v1 = vpop.f32.mrf.mxu1 }
  0xa8   :  { %v241_v6 = vpop.f32.mrf.mxu3 }
  0xac   :  { %v200_v7 = vpop.f32.mrf.mxu0 }
  0xad   :  { %v214_v10 = vadd.f32 %v213_v63, %v200_v7 }
  0xaf   :  { %v251_v14 = vmul.f32 %v247_v11, %v214_v10 }
  0xb1   :  { %v254_v21 = vsel %vm253_vm1, %v251_v14, 0.0 }
  0xb3   :  { %v226_v16 = vpop.f32.mrf.mxu2 }
  0xb4   :  { %v240_v17 = vadd.f32 %v239_v0, %v226_v16  ;;  %v202_v18 = vpop.f32.mrf.mxu0 }
  0xb6   :  { %v252_v20 = vmul.f32 %v248_v15, %v240_v17 }
  0xb8   :  { %v256_v22 = vsel %vm255_vm2, %v252_v20, 0.0 }
  0xb9   :  { %v257_v25 = vadd.f32 %v256_v22, %v254_v21 }
  0xbb   :  { %v228_v26 = vpop.f32.mrf.mxu2  ;;  %258 = vadd.xlane.f32.xlu0 %v257_v25 }
  0xc3   :  { %276 = vadd.xlane.f32.xlu0 %v275_v29 }
 0x12e   :  { %v259_v30 = vpop.xlane.xlu0 %258 }
 0x136   :  { %v277_v31 = vpop.xlane.xlu0 %276 }
 0x137   :  { %v278_v32 = vadd.f32 %v277_v31, %v259_v30 }
 0x139   :  { %280 = vst.msk [vmem:[#allocation8] sm:$0x1] %vm279_vm3, %v278_v32 }
 0x13a   :  { %291 = dma.vmem_to_hbm [thread:$0]  %s287_s5, 16, %s289_s8, [#allocation4]  }
 0x13b   :  { %508 = dma.done.wait [#allocation4], 16  }
 0x13c   :  { %509 = vsyncadd [#allocation4], 4294967280 }
 0x13d   :  { %296 = vsyncpa [#allocation3], 1 }
 0x13e   :  { %297 = vsyncpa [#allocation6], 1 }
 0x13f   :  { %298 = vsyncpa [#allocation4], 1 }

</bundles_post_ra>
